<compile_context>
chip_gen: v5e
topology: v5e:2x2
jax: 0.10.0
libtpu: 0.0.40
codegen_flags: <defaults>
</compile_context>

<pallas_src>
import functools

import jax
import jax.numpy as jnp
import numpy as np
from jax import lax
from jax.experimental import pallas as pl
from jax.experimental.pallas import tpu as pltpu


# K-tile width (lanes): multiple of 256 to keep the MXU full on v6e/v7x and
# small enough that 2 pipelined inputs x 2 buffers stay far below v7x's 64 MiB
# VMEM even for large H.  1024 is a safe cross-generation default.
_MAX_TK = 1024


def _round_up(x, m):
    return ((x + m - 1) // m) * m


def _pick_tk(k_total, max_tk=_MAX_TK):
    # Full-K block when it fits (always a legal block shape); otherwise a
    # 128-aligned tile with a cdiv grid + in-kernel tail masking.
    return k_total if k_total <= max_tk else max_tk


def _masked_block_geometry(shape):
    """Row extent of the (M, K) view that can be nonzero after the mask.

    torch: x[0][:][:H//2] = 1  -> channels [0, min(H//2, C)) of batch 0, which
    in the row-major (M, K) = (B*H, C*W) view is exactly the first mask_count
    flat elements.  Only the first ceil(mask_count/K) rows can be nonzero; pad
    that up to a sublane-aligned (multiple of 8) block height, clamped to M.
    """
    b, c, h, w = shape
    m, k_total = b * h, c * w
    mask_count = min(h // 2, c) * h * w
    r_nz = -(-mask_count // k_total)                 # ceil
    r_pad = min(m, max(8, _round_up(r_nz, 8)))
    return r_pad, mask_count


# ----------------------------- Pallas kernels ------------------------------ #

def _gram_kernel(f_ref, g_ref, acc_ref, *, k_total, tk, inv_div, tail_mask):
    """Full (unmasked) Gram matrix, K-tiled reduction: G = F @ F.T * inv_div."""
    k = pl.program_id(0)

    @pl.when(k == 0)
    def _init():
        acc_ref[...] = jnp.zeros_like(acc_ref)

    f = f_ref[...]                                           # (M, tk) f32
    if tail_mask:  # ragged last tile: zero out-of-range (padded) columns
        col = lax.broadcasted_iota(jnp.int32, f.shape, 1) + k * tk
        f = jnp.where(col < k_total, f, 0.0)

    acc_ref[...] += lax.dot_general(
        f, f, (((1,), (1,)), ((), ())), preferred_element_type=jnp.float32)

    @pl.when(k == pl.num_programs(0) - 1)
    def _finalize():
        g_ref[...] = acc_ref[...] * inv_div


def _masked_gram_loss_kernel(f_ref, t1_ref, t2_ref, g_ref, sums_ref, acc_ref,
                             *, k_total, tk, mask_count, inv_div, tail_mask):
    """Masked Gram (top-left block only) + MSE partial sums vs. two targets.

    f_ref holds the first r_pad rows of the (M, K) feature view, shape
    (r_pad, tk).  The torch mask corresponds, in this row-major view, to
    "flat index (row*K + col) < mask_count", generated from iotas (this also
    zeroes any rows streamed beyond batch 0, since mask_count <= H*K).
    """
    k = pl.program_id(0)

    @pl.when(k == 0)
    def _init():
        acc_ref[...] = jnp.zeros_like(acc_ref)

    f = f_ref[...]                                           # (r_pad, tk) f32
    row = lax.broadcasted_iota(jnp.int32, f.shape, 0)
    col = lax.broadcasted_iota(jnp.int32, f.shape, 1) + k * tk
    keep = row * k_total + col < mask_count                  # forward mask
    if tail_mask:                                            # ragged K tail
        keep = jnp.logical_and(keep, col < k_total)
    fm = jnp.where(keep, f, 0.0)

    acc_ref[...] += lax.dot_general(
        fm, fm, (((1,), (1,)), ((), ())), preferred_element_type=jnp.float32)

    @pl.when(k == pl.num_programs(0) - 1)
    def _finalize():
        g = acc_ref[...] * inv_div
        g_ref[...] = g
        d1 = g - t1_ref[...]
        d2 = g - t2_ref[...]
        sums_ref[0] = jnp.sum(d1 * d1)     # SMEM scalar partial sums
        sums_ref[1] = jnp.sum(d2 * d2)


# ------------------------------ JAX wrappers ------------------------------- #

def gram_matrix(x):
    """Pallas Gram matrix of an NCHW tensor (matches the torch reference)."""
    b, c, h, w = x.shape
    m, k_total = b * h, w * c
    feats = x.reshape(m, k_total).astype(jnp.float32)        # free reshape
    tk = _pick_tk(k_total)
    num_k = pl.cdiv(k_total, tk)
    inv_div = 1.0 / float(b * c * h * w)
    return pl.pallas_call(
        functools.partial(_gram_kernel, k_total=k_total, tk=tk, inv_div=inv_div,
                          tail_mask=(num_k * tk != k_total)),
        grid=(num_k,),
        in_specs=[pl.BlockSpec((m, tk), lambda i: (0, i))],
        out_specs=pl.BlockSpec((m, m), lambda i: (0, 0)),
        out_shape=jax.ShapeDtypeStruct((m, m), jnp.float32),
        scratch_shapes=[pltpu.VMEM((m, m), jnp.float32)],
        compiler_params=pltpu.CompilerParams(
            dimension_semantics=("arbitrary",)),
    )(feats)


@jax.jit
def style_loss3_forward(input1, t1_blk, t2_blk, rest1, rest2):
    b, c, h, w = input1.shape
    m, k_total = b * h, c * w
    r_pad, mask_count = _masked_block_geometry(input1.shape)
    # Free (metadata-only) reshape of the full input; the BlockSpec streams
    # only the first r_pad rows (a superset of everything the mask keeps).
    feats = input1.reshape(m, k_total).astype(jnp.float32)
    inv_div = 1.0 / float(b * c * h * w)
    tk = _pick_tk(k_total)
    num_k = pl.cdiv(k_total, tk)

    g_blk, sums = pl.pallas_call(
        functools.partial(_masked_gram_loss_kernel, k_total=k_total, tk=tk,
                          mask_count=mask_count, inv_div=inv_div,
                          tail_mask=(num_k * tk != k_total)),
        grid=(num_k,),
        in_specs=[pl.BlockSpec((r_pad, tk), lambda i: (0, i)),
                  pl.BlockSpec((r_pad, r_pad), lambda i: (0, 0)),   # DMA'd once
                  pl.BlockSpec((r_pad, r_pad), lambda i: (0, 0))],  # DMA'd once
        out_specs=(pl.BlockSpec((r_pad, r_pad), lambda i: (0, 0)),
                   pl.BlockSpec(memory_space=pltpu.MemorySpace.SMEM)),
        out_shape=(jax.ShapeDtypeStruct((r_pad, r_pad), jnp.float32),
                   jax.ShapeDtypeStruct((2,), jnp.float32)),
        scratch_shapes=[pltpu.VMEM((r_pad, r_pad), jnp.float32)],
        compiler_params=pltpu.CompilerParams(
            dimension_semantics=("arbitrary",)),
    )(feats, t1_blk, t2_blk)

    inv_n = 1.0 / float(m * m)
    loss1 = (sums[0] + rest1) * inv_n
    loss2 = (sums[1] + rest2) * inv_n
    return input1, loss1, loss2, loss1 + loss2, g_blk


class StyleLoss3:
    """JAX/Pallas port of the PyTorch StyleLoss3 module (forward pass)."""

    def __init__(self, target_feature1, target_feature2):
        assert tuple(target_feature1.shape) == tuple(target_feature2.shape)
        self._shape = tuple(target_feature1.shape)
        self._r_pad, _ = _masked_block_geometry(self._shape)
        r = self._r_pad
        self.target1 = gram_matrix(target_feature1)
        self.target2 = gram_matrix(target_feature2)
        # The masked Gram of the forward pass is nonzero only in G[:r, :r].
        # Precompute the target blocks and the constant MSE contribution of
        # the all-zero region once.
        self.t1_blk = self.target1[:r, :r]
        self.t2_blk = self.target2[:r, :r]
        self.rest1 = (jnp.sum(jnp.square(self.target1))
                      - jnp.sum(jnp.square(self.t1_blk)))
        self.rest2 = (jnp.sum(jnp.square(self.target2))
                      - jnp.sum(jnp.square(self.t2_blk)))
        self.loss1 = jnp.float32(0.0)      # mse(target, target) == 0
        self.loss2 = jnp.float32(0.0)
        self.loss = self.loss1 + self.loss2
        self.g = None

    def __call__(self, input1):
        assert tuple(input1.shape) == self._shape, \
            "input must match the target feature shape"
        b, c, h, w = self._shape
        r = self._r_pad
        out, self.loss1, self.loss2, self.loss, g_blk = style_loss3_forward(
            input1, self.t1_blk, self.t2_blk, self.rest1, self.rest2)
        # Full Gram of the masked input (zeros outside the top-left block);
        # kept only for inspection/testing, not part of the torch API.
        m = b * h
        self.g = jnp.zeros((m, m), jnp.float32).at[:r, :r].set(g_blk)
        return out


# ------------------------------ reference ---------------------------------- #

def _ref_forward(x, tf1, tf2):
    def gram_np(a):
        a = np.asarray(a, dtype=np.float64)
        b, c, h, w = a.shape
        f = a.reshape(b * h, w * c)
        return (f @ f.T) / float(b * c * h * w)

    b, c, h, w = x.shape
    mask = np.zeros(x.shape, np.float64)
    mask[0, : h // 2] = 1.0                       # torch x[0][:][:H//2] = 1.0
    t1 = gram_np(tf1)
    t2 = gram_np(tf2)
    g = gram_np(np.asarray(x, np.float64) * mask)
    return t1, t2, g, np.mean((g - t1) ** 2), np.mean((g - t2) ** 2)


# --------------------------------- main ------------------------------------ #

if __name__ == "__main__":
    def run_case(shape):
        key = jax.random.PRNGKey(0)
        k1, k2, k3 = jax.random.split(key, 3)
        tf1 = jax.random.normal(k1, shape, dtype=jnp.float32)
        tf2 = jax.random.normal(k2, shape, dtype=jnp.float32)
        x = jax.random.normal(k3, shape, dtype=jnp.float32)

        module = StyleLoss3(tf1, tf2)
        out = module(x)
        jax.block_until_ready((out, module.loss, module.g))

        t1_r, t2_r, g_r, l1_r, l2_r = _ref_forward(x, tf1, tf2)
        np.testing.assert_allclose(np.asarray(module.target1), t1_r,
                                   rtol=5e-3, atol=1e-5)
        np.testing.assert_allclose(np.asarray(module.target2), t2_r,
                                   rtol=5e-3, atol=1e-5)
        np.testing.assert_allclose(np.asarray(module.g), g_r,
                                   rtol=5e-3, atol=1e-5)
        np.testing.assert_allclose(float(module.loss1), l1_r,
                                   rtol=5e-3, atol=1e-7)
        np.testing.assert_allclose(float(module.loss2), l2_r,
                                   rtol=5e-3, atol=1e-7)
        np.testing.assert_allclose(np.asarray(out), np.asarray(x))  # identity

    # Small shape: K = C*W = 128 -> single K tile.
    run_case((2, 8, 8, 16))
    # K = C*W = 1280 > 1024-lane tile: multi-step K reduction grid + ragged
    # (masked) last K tile.
    run_case((2, 16, 8, 80))
    # B = 1, H = 16: the masked block (r_pad = 8) is smaller than H, so the
    # kernel streams/computes only half the rows of the feature view.
    run_case((1, 32, 16, 16))
    # Mask boundary lands mid-row of the (M, K) view (C does not divide
    # c_keep*H): exercises the partial-row in-kernel mask.
    run_case((2, 6, 8, 64))
    # H < 8: r_pad (8) exceeds H, streamed rows spill into batch 1 and are
    # zeroed by the in-kernel mask.
    run_case((4, 8, 4, 16))

    print("KERNEL_OK")
</pallas_src>

<mosaic_0001>
module attributes {stable_mosaic.version = 11 : i64} {
  func.func @_gram_kernel(%arg0: i32, %arg1: memref<16x128xf32, #tpu.memory_space<vmem>>, %arg2: memref<16x16xf32, #tpu.memory_space<vmem>>, %arg3: memref<16x16xf32, #tpu.memory_space<vmem>>) attributes {dimension_semantics = [#tpu.dimension_semantics<arbitrary>], iteration_bounds = array<i64: 1>, scalar_prefetch = 0 : i64, scratch_operands = 1 : i64, tpu.core_type = #tpu.core_type<tc>, window_params = [{transform_indices = @transform_0, window_bounds = array<i64: 16, 128>}, {pipeline_mode = #tpu.pipeline_mode<synchronous>, transform_indices = @transform_1, window_bounds = array<i64: 16, 16>}]} {
    %c0_i32 = arith.constant 0 : i32
    %0 = arith.cmpi eq, %arg0, %c0_i32 : i32
    %1 = arith.extui %0 : i1 to i32
    %c0_i32_0 = arith.constant 0 : i32
    %2 = arith.cmpi ne, %1, %c0_i32_0 : i32
    scf.if %2 {
      %cst_8 = arith.constant 0.000000e+00 : f32
      %11 = vector.broadcast %cst_8 : f32 to vector<16x16xf32>
      %c0_9 = arith.constant 0 : index
      %c0_10 = arith.constant 0 : index
      %12 = vector.load %arg3[%c0_9, %c0_10] : memref<16x16xf32, #tpu.memory_space<vmem>>, vector<16x16xf32>
      tpu.vector_store %arg3[%c0_9, %c0_10], %11 {strides = array<i32>} : memref<16x16xf32, #tpu.memory_space<vmem>>, vector<16x16xf32>,
    } else {
    }
    %c0 = arith.constant 0 : index
    %c0_1 = arith.constant 0 : index
    %3 = vector.load %arg1[%c0, %c0_1] : memref<16x128xf32, #tpu.memory_space<vmem>>, vector<16x128xf32>
    %c0_2 = arith.constant 0 : index
    %c0_3 = arith.constant 0 : index
    %4 = vector.load %arg3[%c0_2, %c0_3] : memref<16x16xf32, #tpu.memory_space<vmem>>, vector<16x16xf32>
    %cst = arith.constant dense<0.000000e+00> : vector<16x16xf32>
    %5 = tpu.matmul %3, %3, %cst {dimension_numbers = #tpu.dot_dimension_numbers<[1], [1], [0], [0], [0, 0, 1, 0], [], []>} : vector<16x128xf32>, vector<16x128xf32>, vector<16x16xf32> -> vector<16x16xf32>
    %6 = arith.addf %4, %5 : vector<16x16xf32>
    %c0_4 = arith.constant 0 : index
    %c0_5 = arith.constant 0 : index
    %7 = vector.load %arg3[%c0_4, %c0_5] : memref<16x16xf32, #tpu.memory_space<vmem>>, vector<16x16xf32>
    tpu.vector_store %arg3[%c0_4, %c0_5], %6 {strides = array<i32>} : memref<16x16xf32, #tpu.memory_space<vmem>>, vector<16x16xf32>,
    %c0_i32_6 = arith.constant 0 : i32
    %8 = arith.cmpi eq, %arg0, %c0_i32_6 : i32
    %9 = arith.extui %8 : i1 to i32
    %c0_i32_7 = arith.constant 0 : i32
    %10 = arith.cmpi ne, %9, %c0_i32_7 : i32
    scf.if %10 {
      %c0_8 = arith.constant 0 : index
      %c0_9 = arith.constant 0 : index
      %11 = vector.load %arg3[%c0_8, %c0_9] : memref<16x16xf32, #tpu.memory_space<vmem>>, vector<16x16xf32>
      %cst_10 = arith.constant 4.8828125E-4 : f32
      %12 = vector.broadcast %cst_10 : f32 to vector<16x16xf32>
      %13 = arith.mulf %11, %12 : vector<16x16xf32>
      %c0_11 = arith.constant 0 : index
      %c0_12 = arith.constant 0 : index
      %14 = vector.load %arg2[%c0_11, %c0_12] : memref<16x16xf32, #tpu.memory_space<vmem>>, vector<16x16xf32>
      tpu.vector_store %arg2[%c0_11, %c0_12], %13 {strides = array<i32>} : memref<16x16xf32, #tpu.memory_space<vmem>>, vector<16x16xf32>,
    } else {
    }
    return
  }
  func.func @transform_0(%arg0: i32) -> (i32, i32) {
    %c0_i32 = arith.constant 0 : i32
    %c0_i32_0 = arith.constant 0 : i32
    return %c0_i32, %arg0 : i32, i32
  }
  func.func @transform_1(%arg0: i32) -> (i32, i32) {
    %c0_i32 = arith.constant 0 : i32
    %c0_i32_0 = arith.constant 0 : i32
    %c0_i32_1 = arith.constant 0 : i32
    return %c0_i32, %c0_i32_0 : i32, i32
  }
}

</mosaic_0001>

<bundles_post_ra>
// kernel: tpu_custom_call.1
= control target key start
LH: loop header
LB: loop body
LE: loop exit
PB: predicated region body
PF: predicated region fallthrough
CT: control target
= control target key end

     0   :  { %6 = vsyncpa [#allocation4], 0  ;;  %s184_s0 = inlined_call_operand.hbm [shape: f32[16,128], index: 0, kind: input, shape index: {}]   ;;  %s185_s1 = inlined_call_operand.hbm [shape: f32[16,16], index: 1, kind: output, shape index: {}]  }
   0x1   :  { %7 = vsyncpa [#allocation5], 0  ;;  %s12_s8 = sshll.u32 %s184_s0, 4  ;;  %s151_s9 = smov [#allocation3]   ;;  %s13_s8 = int_to_ptr.hbm [resolvable:$true] %s12_s8 }
   0x2   :  { %s14_s10 = sshll.u32 %s151_s9, 4  ;;  %s152_s11 = smov 128   ;;  %s15_s10 = int_to_ptr.vmem [resolvable:$true] %s14_s10 }
   0x3   :  { %s153_s12 = smov 8  }
   0x4   :  { %20 = dma.hbm_to_vmem [thread:$0]  %s13_s8, 256, %s15_s10, [#allocation4], %s152_s11, %s152_s11, %s153_s12  }
   0x5   :  { %147 = dma.done.wait [#allocation4], 256  }
   0x6   :  { %148 = vsyncadd [#allocation4], 4294967040  ;;  %vm29_vm0 = vcmask 130048   ;;  %v154_v0 = vmov 0.0   ;;  %v33_v1 = vld [vmem:[#allocation3 + $0x8] sm:$0xff]  ;;  %v32_v2 = vld [vmem:[#allocation3] sm:$0xff] }
   0x7   :  { %30 = vst.msk [vmem:[#allocation2] sm:$0xff] %vm29_vm0, %v154_v0  ;;  %50 = vmatpush.xpose.msra.mxu0 %v33_v1  ;;  %92 = vmatpush.xpose.msra.mxu1 %v33_v1  ;;  %s155_s0 = smov [#allocation6]   ;;  %s79_s16 = sshll.u32 %s185_s1, 4  ;;  %s80_s16 = int_to_ptr.hbm [resolvable:$true] %s79_s16 }
   0x8   :  { %31 = vst.msk [vmem:[#allocation2 + $0x8] sm:$0xff] %vm29_vm0, %v154_v0  ;;  %s77_s13 = sshll.u32 %s155_s0, 4  ;;  %s78_s13 = int_to_ptr.vmem [resolvable:$true] %s77_s13 }
   0xb   :  { %51 = vmatpush.xpose.msra.mxu0 %v32_v2  ;;  %93 = vmatpush.xpose.msra.mxu1 %v32_v2 }
   0xe   :  { %52 = vmatmul.f32.vlgmr.msra.gmra.mxu0 %v32_v2  ;;  %55 = vmatmul.f32.vlgmr.msra.gmra.mxu1 %v33_v1  ;;  %v34_v3 = vld [vmem:[#allocation2] sm:$0xff] }
   0xf   :  { %v35_v4 = vld [vmem:[#allocation2 + $0x8] sm:$0xff] }
  0x8b   :  { %v53_v5 = vpop.f32.mrf.mxu0  ;;  %v56_v6 = vpop.f32.mrf.mxu1 }
  0x8c   :  { %v59_v7 = vadd.f32 %v53_v5, %v34_v3  ;;  %v60_v8 = vadd.f32 %v56_v6, %v35_v4 }
  0x8e   :  { %62 = vst.msk [vmem:[#allocation2] sm:$0xff] %vm29_vm0, %v59_v7 }
  0x8f   :  { %63 = vst.msk [vmem:[#allocation2 + $0x8] sm:$0xff] %vm29_vm0, %v60_v8 }
  0x95   :  { %v67_v9 = vld [vmem:[#allocation2] sm:$0xff] }
  0x96   :  { %v68_v10 = vld [vmem:[#allocation2 + $0x8] sm:$0xff]  ;;  %v69_v11 = vmul.f32 0.00048828125, %v67_v9 }
  0x97   :  { %v70_v12 = vmul.f32 0.00048828125, %v68_v10 }
  0x98   :  { %71 = vst.msk [vmem:[#allocation6] sm:$0xff] %vm29_vm0, %v69_v11 }
  0x99   :  { %72 = vst.msk [vmem:[#allocation6 + $0x8] sm:$0xff] %vm29_vm0, %v70_v12 }
  0x9a   :  { %85 = dma.vmem_to_hbm [thread:$0]  %s78_s13, 256, %s80_s16, [#allocation5], %s152_s11, %s152_s11, %s153_s12  }
  0x9b   :  { %149 = dma.done.wait [#allocation5], 256  }
  0x9c   :  { %150 = vsyncadd [#allocation5], 4294967040 }
  0x9d   :  { %90 = vsyncpa [#allocation4], 1 }
  0x9e   :  { %91 = vsyncpa [#allocation5], 1 }

</bundles_post_ra>
